<compile_context>
chip_gen: v7x
topology: tpu7x:2x2x1
jax: 0.10.0
libtpu: 0.0.40
codegen_flags: <defaults>
</compile_context>

<pallas_src>
import functools

import jax
import jax.numpy as jnp
from jax import lax
from jax.experimental import pallas as pl
from jax.experimental.pallas import tpu as pltpu


def contrast_kernel(xi_ref, xj_ref, loss_ref, z_ref, pos_ref, *, inv_temp):
    """Per-row NT-Xent loss terms for one query-row tile.

    xi_ref   : VMEM (B, D)      -- view-1 features (full block, resident)
    xj_ref   : VMEM (B, D)      -- view-2 features (full block, resident)
    loss_ref : VMEM (tq, 1) f32 -- out: log(denom_k) - pos_k/temp for tile rows
    z_ref    : VMEM (N, D) f32  -- scratch: normalized concat(z_i, z_j)
    pos_ref  : VMEM (N, 1) f32  -- scratch: positive-pair similarity per row
    inv_temp : python float     -- 1/temperature (buffer -> static constant)
    """
    B, D = xi_ref.shape
    N = 2 * B
    tq = loss_ref.shape[0]

    xi = xi_ref[...].astype(jnp.float32)
    xj = xj_ref[...].astype(jnp.float32)

    # F.normalize(x, dim=1): x / max(||x||_2, 1e-12)
    eps = 1e-12
    zi = xi / jnp.maximum(jnp.sqrt(jnp.sum(xi * xi, axis=1, keepdims=True)), eps)
    zj = xj / jnp.maximum(jnp.sqrt(jnp.sum(xj * xj, axis=1, keepdims=True)), eps)

    # Positive-pair similarity: pos[k] = <z_k, z_{(k+B) mod N}> = <zi_k, zj_k>.
    # O(B*D) row-wise dot; replaces the old NxN iota/mod/where reduction.
    p = jnp.sum(zi * zj, axis=1, keepdims=True)            # (B, 1)
    pos_ref[0:B, :] = p
    pos_ref[B:N, :] = p

    z_ref[0:B, :] = zi
    z_ref[B:N, :] = zj

    # ---- this grid step's query-row tile ----
    row0 = pl.multiple_of(pl.program_id(0) * tq, tq)
    q = z_ref[pl.ds(row0, tq), :]                          # (tq, D) f32
    q_bf = q.astype(jnp.bfloat16)                          # == RHS rows of tile
    qs_bf = (q * inv_temp).astype(jnp.bfloat16)            # 1/temp folded in LHS
    k_bf = z_ref[...].astype(jnp.bfloat16)                 # (N, D)

    # sim/temp for this tile: bf16 MXU inputs, f32 accumulation.
    sim_s = lax.dot_general(
        qs_bf, k_bf,
        dimension_numbers=(((1,), (1,)), ((), ())),
        preferred_element_type=jnp.float32,
    )                                                      # (tq, N)

    # Self-similarity term = diagonal of sim_s, rebuilt from the same bf16
    # products so the subtraction cancels the self term of the row sum
    # (replaces the NxN ~eye mask).  All-zero input rows stay exact (diag=0).
    diag_s = jnp.sum(qs_bf.astype(jnp.float32) * q_bf.astype(jnp.float32),
                     axis=1, keepdims=True)                # (tq, 1)

    e = jnp.exp(sim_s)                                     # (tq, N)
    denom = jnp.sum(e, axis=1, keepdims=True) - jnp.exp(diag_s)

    pos_t = pos_ref[pl.ds(row0, tq), :]                    # (tq, 1)

    # -log(exp(pos/t) / denom) == log(denom) - pos/t   (no exp->log round trip)
    loss_ref[...] = jnp.log(denom) - pos_t * inv_temp


def _pick_row_tile(n, max_tile=256):
    """Largest tq <= max_tile with tq | N and tq % 8 == 0; else the full N."""
    if n <= max_tile:
        return n
    for t in range(max_tile - max_tile % 8, 7, -8):
        if n % t == 0:
            return t
    return n


def contrast_loss(x_i, x_j, temperature=0.5, row_tile=None):
    assert x_i.shape == x_j.shape and x_i.ndim == 2
    B, D = x_i.shape
    N = 2 * B
    tq = _pick_row_tile(N) if row_tile is None else row_tile
    assert N % tq == 0 and (tq == N or tq % 8 == 0), (N, tq)
    grid = (N // tq,)

    kernel = functools.partial(contrast_kernel, inv_temp=1.0 / float(temperature))

    per_row = pl.pallas_call(
        kernel,
        out_shape=jax.ShapeDtypeStruct((N, 1), jnp.float32),
        grid=grid,
        in_specs=[
            pl.BlockSpec((B, D), lambda i: (0, 0)),   # x_i resident across tiles
            pl.BlockSpec((B, D), lambda i: (0, 0)),   # x_j resident across tiles
        ],
        out_specs=pl.BlockSpec((tq, 1), lambda i: (i, 0)),
        scratch_shapes=[
            pltpu.VMEM((N, D), jnp.float32),          # normalized z
            pltpu.VMEM((N, 1), jnp.float32),          # positive-pair sims
        ],
        compiler_params=pltpu.CompilerParams(
            dimension_semantics=("parallel",),        # row tiles are independent
            vmem_limit_bytes=32 * 1024 * 1024,
        ),
    )(x_i, x_j)

    # Tiny epilogue: mean of the N per-row loss terms.
    return jnp.sum(per_row) / N


def contrast_loss_ref(x_i, x_j, temperature=0.5):
    """Plain-JAX reference mirroring the PyTorch forward."""
    B = x_i.shape[0]
    N = 2 * B
    zi = x_i / jnp.maximum(jnp.linalg.norm(x_i, axis=1, keepdims=True), 1e-12)
    zj = x_j / jnp.maximum(jnp.linalg.norm(x_j, axis=1, keepdims=True), 1e-12)
    z = jnp.concatenate([zi, zj], axis=0)
    sim = z @ z.T
    pos = jnp.concatenate([jnp.diagonal(sim, B), jnp.diagonal(sim, -B)], axis=0)
    nom = jnp.exp(pos / temperature)
    neg_mask = 1.0 - jnp.eye(N, dtype=jnp.float32)
    denom = jnp.sum(neg_mask * jnp.exp(sim / temperature), axis=1)
    return jnp.sum(-jnp.log(nom / denom)) / N


if __name__ == "__main__":
    key = jax.random.PRNGKey(0)
    k1, k2 = jax.random.split(key)
    B, D = 8, 32  # batch_size=8, feature dim=32
    x_i = jax.random.normal(k1, (B, D), dtype=jnp.float32)
    x_j = jax.random.normal(k2, (B, D), dtype=jnp.float32)

    # row_tile=8 -> grid of 2 row tiles, exercising the tiled/parallel path.
    loss = contrast_loss(x_i, x_j, temperature=0.5, row_tile=8)
    jax.block_until_ready(loss)

    ref = contrast_loss_ref(x_i, x_j, temperature=0.5)
    # bf16 MXU inputs (f32 accumulate) vs full-f32 reference: loosened tolerance.
    assert abs(float(loss) - float(ref)) < 1e-2, (float(loss), float(ref))

    print("KERNEL_OK")
</pallas_src>

<mosaic_0001>
module attributes {stable_mosaic.version = 11 : i64} {
  func.func @contrast_kernel(%arg0: i32, %arg1: memref<8x32xf32, #tpu.memory_space<vmem>>, %arg2: memref<8x32xf32, #tpu.memory_space<vmem>>, %arg3: memref<8x1xf32, #tpu.memory_space<vmem>>, %arg4: memref<16x32xf32, #tpu.memory_space<vmem>>, %arg5: memref<16x1xf32, #tpu.memory_space<vmem>>) attributes {dimension_semantics = [#tpu.dimension_semantics<parallel>], iteration_bounds = array<i64: 2>, scalar_prefetch = 0 : i64, scratch_operands = 2 : i64, tpu.core_type = #tpu.core_type<tc>, window_params = [{pipeline_mode = #tpu.pipeline_mode<synchronous>, transform_indices = @transform_0, window_bounds = array<i64: 8, 32>}, {pipeline_mode = #tpu.pipeline_mode<synchronous>, transform_indices = @transform_1, window_bounds = array<i64: 8, 32>}, {transform_indices = @transform_2, window_bounds = array<i64: 8, 1>}]} {
    %c0 = arith.constant 0 : index
    %c0_0 = arith.constant 0 : index
    %0 = vector.load %arg1[%c0, %c0_0] : memref<8x32xf32, #tpu.memory_space<vmem>>, vector<8x32xf32>
    %c0_1 = arith.constant 0 : index
    %c0_2 = arith.constant 0 : index
    %1 = vector.load %arg2[%c0_1, %c0_2] : memref<8x32xf32, #tpu.memory_space<vmem>>, vector<8x32xf32>
    %2 = arith.mulf %0, %0 : vector<8x32xf32>
    %cst = arith.constant dense<0.000000e+00> : vector<8xf32>
    %3 = vector.multi_reduction <add>, %2, %cst [1] : vector<8x32xf32> to vector<8xf32>
    %4 = vector.shape_cast %3 : vector<8xf32> to vector<8x1xf32>
    %5 = math.sqrt %4 : vector<8x1xf32>
    %cst_3 = arith.constant 9.99999996E-13 : f32
    %6 = vector.broadcast %cst_3 : f32 to vector<8x1xf32>
    %7 = arith.maximumf %5, %6 : vector<8x1xf32>
    %8 = vector.broadcast %7 : vector<8x1xf32> to vector<8x32xf32>
    %9 = arith.divf %0, %8 : vector<8x32xf32>
    %10 = arith.mulf %1, %1 : vector<8x32xf32>
    %cst_4 = arith.constant dense<0.000000e+00> : vector<8xf32>
    %11 = vector.multi_reduction <add>, %10, %cst_4 [1] : vector<8x32xf32> to vector<8xf32>
    %12 = vector.shape_cast %11 : vector<8xf32> to vector<8x1xf32>
    %13 = math.sqrt %12 : vector<8x1xf32>
    %cst_5 = arith.constant 9.99999996E-13 : f32
    %14 = vector.broadcast %cst_5 : f32 to vector<8x1xf32>
    %15 = arith.maximumf %13, %14 : vector<8x1xf32>
    %16 = vector.broadcast %15 : vector<8x1xf32> to vector<8x32xf32>
    %17 = arith.divf %1, %16 : vector<8x32xf32>
    %18 = arith.mulf %9, %17 : vector<8x32xf32>
    %cst_6 = arith.constant dense<0.000000e+00> : vector<8xf32>
    %19 = vector.multi_reduction <add>, %18, %cst_6 [1] : vector<8x32xf32> to vector<8xf32>
    %20 = vector.shape_cast %19 : vector<8xf32> to vector<8x1xf32>
    %c0_7 = arith.constant 0 : index
    %c0_8 = arith.constant 0 : index
    %21 = vector.load %arg5[%c0_7, %c0_8] : memref<16x1xf32, #tpu.memory_space<vmem>>, vector<8x1xf32>
    tpu.vector_store %arg5[%c0_7, %c0_8], %20 {strides = array<i32>} : memref<16x1xf32, #tpu.memory_space<vmem>>, vector<8x1xf32>,
    %c8 = arith.constant 8 : index
    %c0_9 = arith.constant 0 : index
    %22 = vector.load %arg5[%c8, %c0_9] : memref<16x1xf32, #tpu.memory_space<vmem>>, vector<8x1xf32>
    tpu.vector_store %arg5[%c8, %c0_9], %20 {strides = array<i32>} : memref<16x1xf32, #tpu.memory_space<vmem>>, vector<8x1xf32>,
    %c0_10 = arith.constant 0 : index
    %c0_11 = arith.constant 0 : index
    %23 = vector.load %arg4[%c0_10, %c0_11] : memref<16x32xf32, #tpu.memory_space<vmem>>, vector<8x32xf32>
    tpu.vector_store %arg4[%c0_10, %c0_11], %9 {strides = array<i32>} : memref<16x32xf32, #tpu.memory_space<vmem>>, vector<8x32xf32>,
    %c8_12 = arith.constant 8 : index
    %c0_13 = arith.constant 0 : index
    %24 = vector.load %arg4[%c8_12, %c0_13] : memref<16x32xf32, #tpu.memory_space<vmem>>, vector<8x32xf32>
    tpu.vector_store %arg4[%c8_12, %c0_13], %17 {strides = array<i32>} : memref<16x32xf32, #tpu.memory_space<vmem>>, vector<8x32xf32>,
    %c8_i32 = arith.constant 8 : i32
    %25 = arith.muli %arg0, %c8_i32 : i32
    %26 = tpu.assume_multiple %25, 8 : i32
    %27 = arith.index_cast %26 : i32 to index
    %c0_14 = arith.constant 0 : index
    %28 = vector.load %arg4[%27, %c0_14] : memref<16x32xf32, #tpu.memory_space<vmem>>, vector<8x32xf32>
    %29 = arith.truncf %28 : vector<8x32xf32> to vector<8x32xbf16>
    %cst_15 = arith.constant 2.000000e+00 : f32
    %30 = vector.broadcast %cst_15 : f32 to vector<8x32xf32>
    %31 = arith.mulf %28, %30 : vector<8x32xf32>
    %32 = arith.truncf %31 : vector<8x32xf32> to vector<8x32xbf16>
    %c0_16 = arith.constant 0 : index
    %c0_17 = arith.constant 0 : index
    %33 = vector.load %arg4[%c0_16, %c0_17] : memref<16x32xf32, #tpu.memory_space<vmem>>, vector<16x32xf32>
    %34 = arith.truncf %33 : vector<16x32xf32> to vector<16x32xbf16>
    %cst_18 = arith.constant dense<0.000000e+00> : vector<8x16xf32>
    %35 = tpu.matmul %32, %34, %cst_18 {dimension_numbers = #tpu.dot_dimension_numbers<[1], [1], [0], [0], [0, 0, 1, 0], [], []>} : vector<8x32xbf16>, vector<16x32xbf16>, vector<8x16xf32> -> vector<8x16xf32>
    %36 = arith.extf %32 : vector<8x32xbf16> to vector<8x32xf32>
    %37 = arith.extf %29 : vector<8x32xbf16> to vector<8x32xf32>
    %38 = arith.mulf %36, %37 : vector<8x32xf32>
    %cst_19 = arith.constant dense<0.000000e+00> : vector<8xf32>
    %39 = vector.multi_reduction <add>, %38, %cst_19 [1] : vector<8x32xf32> to vector<8xf32>
    %40 = vector.shape_cast %39 : vector<8xf32> to vector<8x1xf32>
    %41 = math.exp %35 : vector<8x16xf32>
    %cst_20 = arith.constant dense<0.000000e+00> : vector<8xf32>
    %42 = vector.multi_reduction <add>, %41, %cst_20 [1] : vector<8x16xf32> to vector<8xf32>
    %43 = vector.shape_cast %42 : vector<8xf32> to vector<8x1xf32>
    %44 = math.exp %40 : vector<8x1xf32>
    %45 = arith.subf %43, %44 : vector<8x1xf32>
    %46 = arith.index_cast %26 : i32 to index
    %c0_21 = arith.constant 0 : index
    %47 = vector.load %arg5[%46, %c0_21] : memref<16x1xf32, #tpu.memory_space<vmem>>, vector<8x1xf32>
    %48 = math.log %45 : vector<8x1xf32>
    %cst_22 = arith.constant 2.000000e+00 : f32
    %49 = vector.broadcast %cst_22 : f32 to vector<8x1xf32>
    %50 = arith.mulf %47, %49 : vector<8x1xf32>
    %51 = arith.subf %48, %50 : vector<8x1xf32>
    %c0_23 = arith.constant 0 : index
    %c0_24 = arith.constant 0 : index
    %52 = vector.load %arg3[%c0_23, %c0_24] : memref<8x1xf32, #tpu.memory_space<vmem>>, vector<8x1xf32>
    tpu.vector_store %arg3[%c0_23, %c0_24], %51 {strides = array<i32>} : memref<8x1xf32, #tpu.memory_space<vmem>>, vector<8x1xf32>,
    return
  }
  func.func @transform_0(%arg0: i32) -> (i32, i32) {
    %c0_i32 = arith.constant 0 : i32
    %c0_i32_0 = arith.constant 0 : i32
    %c0_i32_1 = arith.constant 0 : i32
    return %c0_i32, %c0_i32_0 : i32, i32
  }
  func.func @transform_1(%arg0: i32) -> (i32, i32) {
    %c0_i32 = arith.constant 0 : i32
    %c0_i32_0 = arith.constant 0 : i32
    %c0_i32_1 = arith.constant 0 : i32
    return %c0_i32, %c0_i32_0 : i32, i32
  }
  func.func @transform_2(%arg0: i32) -> (i32, i32) {
    %c0_i32 = arith.constant 0 : i32
    %c0_i32_0 = arith.constant 0 : i32
    return %arg0, %c0_i32 : i32, i32
  }
}

</mosaic_0001>

<bundles_post_ra>
// kernel: tpu_custom_call.1
= control target key start
LH: loop header
LB: loop body
LE: loop exit
PB: predicated region body
PF: predicated region fallthrough
CT: control target
= control target key end

     0   :  { %7 = vsyncpa [#allocation5], 0  ;;  %s596_s0 = inlined_call_operand.hbm [shape: f32[8,32], index: 0, kind: input, shape index: {}]   ;;  %s597_s1 = inlined_call_operand.hbm [shape: f32[8,32], index: 1, kind: input, shape index: {}]   ;;  %s598_s2 = inlined_call_operand.vmem [shape: f32[16,1], index: 2, kind: output, shape index: {}]  }
   0x1   :  { %8 = vsyncpa [#allocation7], 0  ;;  %s490_s9 = smov 0  }
   0x2 LB: > { %s496_s10 = sadd.s32 4294967295, %s469_s9   ;;  %p335_p0 = scmp.ge.s32.totalorder %s469_s9, 1  ;;  %s469_s9 = sphi %s490_s9, %s14_s9  }
   0x3   : > { %p87_p1 = scmp.lt.s32.totalorder %s469_s9, 3  ;;  %p599_p2 = scmp.eq.s32.totalorder %s496_s10, 0 }
   0x4   : > { %s471_s12 = smov [#allocation4]   ;;  %s472_s14 = smov [#allocation6]  }
   0x5   : > { %p501_p3 = pnand %p335_p0, %p87_p1  ;;  %s100_s13 = sshll.u32 %s471_s12, 4  ;;  %s101_s13 = int_to_ptr.vmem [resolvable:$true] %s100_s13 }
   0x6   : > { %s111_s15 = sshll.u32 %s472_s14, 4  ;;  %s399_s19 = scalar_lea.hbm %s596_s0, 128  ;;  %s513_s15 = int_to_ptr.vmem [resolvable:$true] %s111_s15 }
   0x7   : > { %s601_s11 = scalar_select %p501_p3, 1, 0 }
   0x8   : > { %p362_p4 = pneg %p501_p3  ;;  %p400_p6 = scmp.ne.s32.totalorder %s596_s0, %s399_s19 }
   0x9   : > { %p406_p10 = scmp.lt.u32.totalorder %s399_s19, %s596_s0 }
   0xa   : > { %p509_p5 = pnand %p599_p2, %p362_p4 }
   0xc   : > { %p401_p7 = pneg %p509_p5 }
   0xe   : > { %p402_p8 = pnand %p401_p7, %p400_p6 }
  0x10   : > { %p403_p9 = pneg %p402_p8 }
  0x12   : > { %p408_p11 = pnand %p406_p10, %p403_p9 }
  0x14   : > { %411 = shalt.err (!%p408_p11)
}
  0x15   : > { %s412_s24 = scalar_lea.vmem %s101_s13, 128  ;;  %p420_p1 = scmp.lt.s32.totalorder %s101_s13, %s101_s13 }
  0x16   : > { %p413_p12 = scmp.ne.s32.totalorder %s101_s13, %s412_s24  ;;  %p421_p4 = scmp.lt.s32.totalorder %s412_s24, %s412_s24 }
  0x18   : > { %p415_p13 = pnand %p413_p12, %p401_p7  ;;  %p422_p2 = por %p421_p4, %p420_p1 }
  0x1a   : > { %p416_p0 = pneg %p415_p13 }
  0x1c   : > { %p423_p3 = pnand %p422_p2, %p416_p0 }
  0x1e   : > { %426 = shalt.err (!%p423_p3)
}
  0x1f   : > { %365 = dma.hbm_to_vmem [thread:$0]  (!%p509_p5), %s596_s0, 128, %s101_s13, [#allocation5]  }
  0x20   : > { %s427_s29 = scalar_lea.hbm %s597_s1, 128 }
  0x21   : > { %p428_p6 = scmp.ne.s32.totalorder %s597_s1, %s427_s29  ;;  %p434_p3 = scmp.lt.u32.totalorder %s427_s29, %s597_s1 }
  0x23   : > { %p430_p8 = pnand %p428_p6, %p401_p7 }
  0x25   : > { %p431_p2 = pneg %p430_p8 }
  0x27   : > { %p436_p9 = pnand %p434_p3, %p431_p2 }
  0x29   : > { %439 = shalt.err (!%p436_p9)
}
  0x2a   : > { %s440_s6 = scalar_lea.vmem %s513_s15, 128  ;;  %p448_p13 = scmp.lt.s32.totalorder %s513_s15, %s513_s15 }
  0x2b   : > { %p441_p10 = scmp.ne.s32.totalorder %s513_s15, %s440_s6  ;;  %p449_p0 = scmp.lt.s32.totalorder %s440_s6, %s440_s6 }
  0x2d   : > { %p443_p11 = pnand %p441_p10, %p401_p7  ;;  %p450_p1 = por %p449_p0, %p448_p13 }
  0x2f   : > { %p444_p12 = pneg %p443_p11 }
  0x31   : > { %p451_p4 = pnand %p450_p1, %p444_p12 }
  0x33   : > { %454 = shalt.err (!%p451_p4)
}
  0x34   : > { %368 = dma.hbm_to_vmem [thread:$0]  (!%p509_p5), %s597_s1, 128, %s513_s15, [#allocation7]  }
  0x35   : > { %p603_p6 = scmp.ne.s32.totalorder %s601_s11, 0 }
  0x36   : > { %p604_p8 = scmp.eq.s32.totalorder (!%p603_p6), %s496_s10, 0 }
  0x37   : > { %124 = sbr.rel (%p603_p6) target bundleno = 651 (0x28b), region = 28 }
  0x3e   : > { %460 = dma.done.wait (%p604_p8), [#allocation5], 128   ;;  %p605_p7 = pmov %p604_p8 }
  0x40   : > { %462 = vsyncadd (%p605_p7), [#allocation5], 4294967168  ;;  %p606_p2 = pmov %p605_p7 }
  0x42   : > { %464 = dma.done.wait (%p606_p2), [#allocation7], 128   ;;  %p607_p3 = pmov %p606_p2 }
  0x43   : > { %v149_v0 = vld [vmem:[#allocation4] sm:$0xff]  ;;  %vm152_vm0 = vcmask 261120   ;;  %v150_v1 = vld [vmem:[#allocation6] sm:$0xff]  ;;  %v473_v6 = vmov 0.0   ;;  %vm474_vm1 = vmmov 0   ;;  %s342_s11 = sshll.u32 %s496_s10, 3 }
  0x44   : > { %466 = vsyncadd (%p607_p3), [#allocation7], 4294967168  ;;  %v151_v2 = vmul.f32 %v149_v0, %v149_v0  ;;  %v166_v3 = vmul.f32 %v150_v1, %v150_v1  ;;  %348 = vmatprep.subr.bf16.mxu0 %v473_v6  ;;  %350 = vmatprep.mubr.msk.bf16.mxu0 %vm474_vm1, %v473_v6  ;;  %s190_s12 = scalar_lea.vmem [#allocation2], %s342_s11  ;;  %vm184_vm6 = vcmask 7168   ;;  %vm252_vm7 = vcmask 130048   ;;  %p144_p5 = scmp.lt.s32.totalorder %s496_s10, 1 }
  0x45   : > { %s259_s14 = scalar_lea.vmem [#allocation3], %s342_s11 }
  0x46   : > { %v153_v4 = vsel %vm152_vm0, %v151_v2, 0.0  ;;  %v167_v5 = vsel %vm152_vm0, %v166_v3, 0.0  ;;  %s145_s13 = scalar_select %p144_p5, %s496_s10, 1 }
  0x47   : > { %154 = vadd.xlane.f32.xlu0 %v153_v4 }
  0x48   : > { %s341_s15 = sshll.u32 %s145_s13, 3 }
  0x49   : > { %s147_s18 = scalar_lea.vmem %s598_s2, %s341_s15 }
  0x4b   : > { %168 = vadd.xlane.f32.xlu0 %v167_v5 }
  0xd4   : > { %v155_v7 = vpop.xlane.xlu0 %154 }
  0xd5   : > { %385 = vrsqrt.f32 %v155_v7  ;;  %vm158_vm2 = vcmp.eq.f32.partialorder %v155_v7, inf  ;;  %v161_v11 = vand.u32 2147483648, %v155_v7  ;;  %vm160_vm3 = vcmp.eq.f32.partialorder %v155_v7, 0.0 }
  0xd8   : > { %v169_v8 = vpop.xlane.xlu0 %168 }
  0xd9   : > { %387 = vrsqrt.f32 %v169_v8  ;;  %vm172_vm4 = vcmp.eq.f32.partialorder %v169_v8, inf  ;;  %v175_v17 = vand.u32 2147483648, %v169_v8  ;;  %vm174_vm5 = vcmp.eq.f32.partialorder %v169_v8, 0.0 }
  0xdf   : > { %v386_v9 = vpop.eup %385 }
  0xe0   : > { %v157_v10 = vmul.f32 %v386_v9, %v155_v7 }
  0xe2   : > { %v159_v12 = vsel %vm158_vm2, %v155_v7, %v157_v10 }
  0xe3   : > { %v388_v13 = vpop.eup %387  ;;  %v162_v14 = vsel %vm160_vm3, %v161_v11, %v159_v12 }
  0xe4   : > { %v163_v15 = vmax.f32 %v162_v14, 1e-12  ;;  %v171_v16 = vmul.f32 %v388_v13, %v169_v8 }
  0xe6   : > { %389 = vrcp.f32 %v163_v15  ;;  %v173_v18 = vsel %vm172_vm4, %v169_v8, %v171_v16 }
  0xe7   : > { %v176_v19 = vsel %vm174_vm5, %v175_v17, %v173_v18 }
  0xe8   : > { %v177_v20 = vmax.f32 %v176_v19, 1e-12 }
  0xea   : > { %391 = vrcp.f32 %v177_v20 }
  0xf0   : > { %v390_v21 = vpop.eup %389 }
  0xf1   : > { %v165_v22 = vmul.f32 %v390_v21, %v149_v0 }
  0xf3   : > { %187 = vst.msk [vmem:[#allocation2] sm:$0xff] %vm152_vm0, %v165_v22 }
  0xf4   : > { %v392_v23 = vpop.eup %391 }
  0xf5   : > { %v179_v24 = vmul.f32 %v392_v23, %v150_v1 }
  0xf7   : > { %v180_v25 = vmul.f32 %v179_v24, %v165_v22  ;;  %188 = vst.msk [vmem:[#allocation2 + $0x8] sm:$0xff] %vm152_vm0, %v179_v24 }
  0xf9   : > { %v181_v26 = vsel %vm152_vm0, %v180_v25, 0.0 }
  0xfa   : > { %182 = vadd.xlane.f32.xlu0 %v181_v26  ;;  %v195_v27 = vld [vmem:[#allocation2] sm:$0xff] }
  0xfe   : > { %v196_v28 = vld [vmem:[#allocation2 + $0x8] sm:$0xff]  ;;  %v191_v29 = vld [vmem:[%s190_s12] sm:$0xff] }
  0xff   : > { %v197_v30 = vpack.c.bf16 %v196_v28, %v195_v27  ;;  %v192_v31 = vpack.c.bf16 %v191_v29, %v191_v29  ;;  %v193_v32 = vmul.f32 2.0, %v191_v29 }
 0x101   : > { %v202_v33 = vsel %vm152_vm0, %v197_v30, 0  ;;  %v194_v34 = vpack.c.bf16 %v193_v32, %v193_v32  ;;  %v245_v36 = vunpack.c.l.bf16 %v192_v31 }
 0x102   : > { %349 = vmatpush3.bf16.xpose.msra.mxu0 %v202_v33 }
 0x103   : > { %v244_v35 = vunpack.c.l.bf16 %v194_v34 }
 0x105   : > { %v246_v37 = vmul.f32 %v245_v36, %v244_v35 }
 0x107   : > { %v247_v38 = vsel %vm152_vm0, %v246_v37, 0.0 }
 0x108   : > { %248 = vadd.xlane.f32.xlu1 %v247_v38 }
 0x109   : > { %351 = vmatmul.mubr.msk.bf16.vlgmr.msra.gmra.mrb[0].mxu0 %vm152_vm0, %v194_v34 }
 0x187   : > { %v183_v39 = vpop.xlane.xlu0 %182 }
 0x188   : > { %185 = vst.msk [vmem:[#allocation3] sm:$0xff] %vm184_vm6, %v183_v39  ;;  %186 = vst.msk [vmem:[#allocation3 + $0x8] sm:$0xff] %vm184_vm6, %v183_v39 }
 0x18f   : > { %v260_v52 = vld [vmem:[%s259_s14] sm:$0xff] }
 0x190   : > { %v263_v55 = vmul.f32 2.0, %v260_v52 }
 0x195   : > { %v249_v47 = vpop.xlane.xlu1 %248 }
 0x196   : > { %v256_v48 = vmul.f32 1.442695, %v249_v47 }
 0x1dc   : > { %v238_v40 = vpop.f32.mrb[0].mxu0 }
 0x1dd   : > { %v250_v41 = vmul.f32 1.442695, %v238_v40  ;;  %v352_v42 = vpop.f32.mrb[1].mxu0 }
 0x1de   : > { %v241_v43 = vpop.f32.mrb[2].mxu0 }
 0x1df   : > { %393 = vpow2.f32 %v250_v41  ;;  %v353_v44 = vpop.f32.mrb[3].mxu0 }
 0x1e0   : > { %395 = vpow2.f32 %v256_v48 }
 0x1e9   : > { %v394_v45 = vpop.eup %393 }
 0x1ea   : > { %v253_v46 = vsel %vm252_vm7, %v394_v45, 0.0  ;;  %v396_v49 = vpop.eup %395 }
 0x1eb   : > { %254 = vadd.xlane.f32.xlu1 %v253_v46 }
 0x278   : > { %v255_v50 = vpop.xlane.xlu1 %254 }
 0x279   : > { %v258_v51 = vsub.f32 %v255_v50, %v396_v49 }
 0x27b   : > { %397 = vlog2.f32 %v258_v51 }
 0x285   : > { %v398_v53 = vpop.eup %397 }
 0x286   : > { %v262_v54 = vmul.f32 0.6931472, %v398_v53 }
 0x288   : > { %v264_v56 = vsub.f32 %v262_v54, %v263_v55 }
 0x28a   : > { %265 = vst.msk [vmem:[%s147_s18] sm:$0xff] %vm184_vm6, %v264_v56 }
 0x28b PF: > { %s14_s9 = sadd.s32 1, %s469_s9  }
 0x28c   : > { %p11_p9 = scmp.ge.s32.totalorder %s14_s9, 4  }
 0x28e   :  { %13 = sbr.rel (!%p11_p9) target bundleno = 2 (0x2), region = 66 }
 0x295   :  { %285 = vsyncpa [#allocation5], 1 }
 0x296   :  { %287 = vsyncpa [#allocation5 + $0x1], 1 }
 0x297   :  { %288 = vsyncpa [#allocation7], 1 }

</bundles_post_ra>
